<compile_context>
chip_gen: v5e
topology: v5e:2x2
jax: 0.10.0
libtpu: 0.0.40
codegen_flags: <defaults>
</compile_context>

<pallas_src>
import functools

import jax
import jax.numpy as jnp
import numpy as np
from jax.experimental import pallas as pl
from jax.experimental.pallas import tpu as pltpu

# Large finite negative used instead of -inf so that a fully-masked row yields
# a uniform softmax instead of NaN; exp() underflows to exactly 0 for normal
# rows, matching masked_fill(-inf) behaviour elsewhere.
_MASK_VALUE = -1e30


def _sdpa_kernel(has_prev, has_amask, has_kpm, emit_scores, lk_valid,
                 mxu_bf16, scale_ref, *refs):
    """One grid step = TB (bs*head) slabs x TQ query rows.

    scale_ref  : (1,)            SMEM f32 (softmax scale = head_dim ** -0.5)
    q_ref      : (TB, TQ, Dk)    VMEM
    k_ref      : (TB, Dk, Lkp)   VMEM
    v_ref      : (TB, Lkp, Dv)   VMEM
    prev_ref   : (TB, TQ, Lkp)   VMEM (optional residual attention scores)
    amask_ref  : (TQ, Lkp)       VMEM f32 additive (optional, shared over B)
    kpm_ref    : (TB, 1, Lkp)    VMEM f32 additive (optional)
    out_ref    : (TB, TQ, Dv)    VMEM
    attn_ref   : (TB, TQ, Lkp)   VMEM
    scores_ref : (TB, TQ, Lkp)   VMEM (optional)
    """
    it = iter(refs)
    q_ref, k_ref, v_ref = next(it), next(it), next(it)
    prev_ref = next(it) if has_prev else None
    amask_ref = next(it) if has_amask else None
    kpm_ref = next(it) if has_kpm else None
    out_ref = next(it)
    attn_ref = next(it)
    scores_ref = next(it) if emit_scores else None

    q = q_ref[...]
    k = k_ref[...]
    v = v_ref[...]
    scale = scale_ref[0]

    mm_dtype = q.dtype
    if mxu_bf16 and q.dtype == jnp.float32:
        mm_dtype = jnp.bfloat16

    # Fold the softmax scale into q (Lq x Dk — cheaper than scaling Lq x Lk).
    qs = (q * scale.astype(q.dtype)).astype(mm_dtype)
    scores = jnp.einsum("bqd,bdk->bqk", qs, k.astype(mm_dtype),
                        preferred_element_type=jnp.float32)

    if has_prev:
        scores = scores + prev_ref[...].astype(jnp.float32)
    if has_amask:
        scores = scores + amask_ref[...][None]          # (1, TQ, Lkp)
    if has_kpm:
        scores = scores + kpm_ref[...]                  # (TB, 1, Lkp)
    lkp = scores.shape[-1]
    if lkp != lk_valid:                                 # mask padded columns
        col = jax.lax.broadcasted_iota(jnp.int32, scores.shape, 2)
        scores = jnp.where(col < lk_valid, scores, _MASK_VALUE)

    # Numerically stable softmax in f32.  Exact divide: attn weights are an
    # API output, rows should sum to 1.
    m = jnp.max(scores, axis=-1, keepdims=True)
    e = jnp.exp(scores - m)
    denom = jnp.sum(e, axis=-1, keepdims=True)
    weights = e / denom

    pv_dtype = v.dtype
    if mxu_bf16 and v.dtype == jnp.float32:
        pv_dtype = jnp.bfloat16
    out = jnp.einsum("bqk,bkd->bqd", weights.astype(pv_dtype),
                     v.astype(pv_dtype), preferred_element_type=jnp.float32)

    out_ref[...] = out.astype(out_ref.dtype)
    attn_ref[...] = weights.astype(attn_ref.dtype)
    if emit_scores:
        scores_ref[...] = scores.astype(scores_ref.dtype)


def _vmem_capacity_bytes():
    try:
        info = pltpu.get_tpu_info()
        cap = getattr(info, "vmem_capacity_bytes", None)
        if cap:
            return int(cap)
    except Exception:
        pass
    return 64 * 1024 * 1024  # conservative (v7x per-TC figure)


def _vmem_budget():
    """(budget for blocks+temps, explicit scoped vmem limit) per generation."""
    cap = _vmem_capacity_bytes()
    # ~40 MiB on v5e/v6e (128 MiB physical), ~21 MiB on v7x (64 MiB physical).
    budget = min(cap // 3, 40 * 1024 * 1024)
    vmem_limit = min(cap * 3 // 4, max(2 * budget, 32 * 1024 * 1024))
    return budget, max(vmem_limit, budget)


def scaled_dot_product_attention(q, k, v, scale, prev=None,
                                 key_padding_mask=None, attn_mask=None,
                                 res_attention=False, mxu_bf16=False,
                                 tq_cap=256):
    """Pallas implementation of PatchTST ScaledDotProductAttention.forward.

    q: [bs, H, Lq, Dk], k: [bs, H, Dk, Lk], v: [bs, H, Lk, Dv]
    Returns (output, attn_weights[, attn_scores]).
    """
    bs, H, Lq, Dk = q.shape
    Lk = k.shape[-1]
    Dv = v.shape[-1]
    B = bs * H

    has_prev = prev is not None
    has_amask = attn_mask is not None
    has_kpm = key_padding_mask is not None
    emit_scores = bool(res_attention)

    # Lane-dense attn/scores stores: pad Lk to a multiple of 128, but only
    # when Lk is already large (for small Lk the extra traffic outweighs it).
    if Lk > 128 and Lk % 128 != 0:
        Lkp = ((Lk + 127) // 128) * 128
    else:
        Lkp = Lk
    pad_k = Lkp - Lk

    qf = q.reshape(B, Lq, Dk)
    kf = k.reshape(B, Dk, Lk)
    vf = v.reshape(B, Lk, Dv)
    if pad_k:
        kf = jnp.pad(kf, ((0, 0), (0, 0), (0, pad_k)))
        vf = jnp.pad(vf, ((0, 0), (0, pad_k), (0, 0)))

    scale_arr = jnp.asarray(scale, dtype=jnp.float32).reshape((1,))

    # ---- VMEM accounting: double-buffered blocks + live f32 temporaries ----
    isz = jnp.dtype(q.dtype).itemsize
    prev_isz = jnp.dtype(prev.dtype).itemsize if has_prev else 0
    out_isz = attn_isz = scores_isz = isz

    def footprint(tb, tq):
        blocks = tb * tq * Dk * isz                       # q
        blocks += tb * Dk * Lkp * isz                     # k
        blocks += tb * Lkp * Dv * isz                     # v
        if has_prev:
            blocks += tb * tq * Lkp * prev_isz
        if has_amask:
            blocks += tq * Lkp * 4
        if has_kpm:
            blocks += tb * Lkp * 4
        blocks += tb * tq * Dv * out_isz                  # out
        blocks += tb * tq * Lkp * attn_isz                # attn
        if emit_scores:
            blocks += tb * tq * Lkp * scores_isz
        temps = tb * tq * (3 * Lkp + Dv + Dk) * 4         # scores, e, w, acc
        return 2 * blocks + temps

    budget, vmem_limit = _vmem_budget()

    # ---- q-row tile (second-last block dim must be %8==0 or the full Lq) ----
    tq_all = [d for d in range(1, Lq + 1)
              if Lq % d == 0 and (d == Lq or d % 8 == 0)]
    tq_cands = [d for d in tq_all if d <= tq_cap] or [min(tq_all)]
    tq_fit = [d for d in tq_cands if footprint(1, d) <= budget]
    TQ = max(tq_fit) if tq_fit else min(tq_cands)
    Gq = Lq // TQ

    # ---- (bs*head) slab tile; prefer >=2 (ideally even) total grid steps ----
    tb_all = [d for d in range(1, B + 1) if B % d == 0]
    tb_fit = [d for d in tb_all if footprint(d, TQ) <= budget] or [1]
    pref = [d for d in tb_fit
            if (B // d) * Gq >= 2 and ((B // d) * Gq) % 2 == 0]
    if not pref:
        pref = [d for d in tb_fit if (B // d) * Gq >= 2] or tb_fit
    TB = max(pref)
    Gb = B // TB

    inputs = [scale_arr, qf, kf, vf]
    in_specs = [
        pl.BlockSpec(memory_space=pltpu.MemorySpace.SMEM),            # scale
        pl.BlockSpec((TB, TQ, Dk), lambda b, iq: (b, iq, 0)),         # q
        pl.BlockSpec((TB, Dk, Lkp), lambda b, iq: (b, 0, 0)),         # k
        pl.BlockSpec((TB, Lkp, Dv), lambda b, iq: (b, 0, 0)),         # v
    ]

    if has_prev:
        pf = prev.reshape(B, Lq, Lk)
        if pad_k:
            pf = jnp.pad(pf, ((0, 0), (0, 0), (0, pad_k)))
        inputs.append(pf)
        in_specs.append(pl.BlockSpec((TB, TQ, Lkp), lambda b, iq: (b, iq, 0)))

    if has_amask:
        am = jnp.asarray(attn_mask)
        am2 = am.reshape(am.shape[-2], am.shape[-1])      # leading dims are 1
        if am2.dtype == jnp.bool_:
            amf = jnp.where(am2, jnp.float32(_MASK_VALUE), jnp.float32(0.0))
        else:
            amf = am2.astype(jnp.float32)
        if pad_k:
            amf = jnp.pad(amf, ((0, 0), (0, pad_k)))
        inputs.append(amf)
        in_specs.append(pl.BlockSpec((TQ, Lkp), lambda b, iq: (iq, 0)))

    if has_kpm:
        kpm = jnp.asarray(key_padding_mask).astype(jnp.bool_)  # (bs, Lk)
        kpmf = jnp.where(kpm, jnp.float32(_MASK_VALUE), jnp.float32(0.0))
        kpmf = jnp.broadcast_to(kpmf[:, None, :], (bs, H, Lk)).reshape(B, 1, Lk)
        if pad_k:
            kpmf = jnp.pad(kpmf, ((0, 0), (0, 0), (0, pad_k)))
        inputs.append(kpmf)
        in_specs.append(pl.BlockSpec((TB, 1, Lkp), lambda b, iq: (b, 0, 0)))

    out_shapes = [
        jax.ShapeDtypeStruct((B, Lq, Dv), q.dtype),                   # output
        jax.ShapeDtypeStruct((B, Lq, Lkp), q.dtype),                  # attn
    ]
    out_specs = [
        pl.BlockSpec((TB, TQ, Dv), lambda b, iq: (b, iq, 0)),
        pl.BlockSpec((TB, TQ, Lkp), lambda b, iq: (b, iq, 0)),
    ]
    if emit_scores:
        out_shapes.append(jax.ShapeDtypeStruct((B, Lq, Lkp), q.dtype))
        out_specs.append(pl.BlockSpec((TB, TQ, Lkp), lambda b, iq: (b, iq, 0)))

    kernel = functools.partial(_sdpa_kernel, has_prev, has_amask, has_kpm,
                               emit_scores, Lk, mxu_bf16)

    results = pl.pallas_call(
        kernel,
        out_shape=tuple(out_shapes),
        grid_spec=pltpu.PrefetchScalarGridSpec(
            num_scalar_prefetch=0,
            grid=(Gb, Gq),
            in_specs=in_specs,
            out_specs=out_specs,
        ),
        compiler_params=pltpu.CompilerParams(
            dimension_semantics=("parallel", "arbitrary"),
            vmem_limit_bytes=int(vmem_limit)),
    )(*inputs)

    out = results[0].reshape(bs, H, Lq, Dv)
    attn = results[1]
    if pad_k:
        attn = attn[..., :Lk]
    attn = attn.reshape(bs, H, Lq, Lk)
    if emit_scores:
        scores = results[2]
        if pad_k:
            scores = scores[..., :Lk]
        scores = scores.reshape(bs, H, Lq, Lk)
        return out, attn, scores
    return out, attn


def _reference(q, k, v, scale, prev=None, key_padding_mask=None,
               attn_mask=None):
    scores = jnp.einsum("bhqd,bhdk->bhqk", q.astype(jnp.float32),
                        k.astype(jnp.float32)) * scale
    if prev is not None:
        scores = scores + prev.astype(jnp.float32)
    if attn_mask is not None:
        if attn_mask.dtype == jnp.bool_:
            scores = scores + jnp.where(attn_mask, _MASK_VALUE, 0.0)[None]
        else:
            scores = scores + attn_mask.astype(jnp.float32)[None]
    if key_padding_mask is not None:
        scores = scores + jnp.where(key_padding_mask[:, None, None, :],
                                    _MASK_VALUE, 0.0)
    w = jax.nn.softmax(scores, axis=-1)
    out = jnp.einsum("bhqk,bhkd->bhqd", w, v.astype(jnp.float32))
    return out, w, scores


if __name__ == "__main__":
    # Module config: d_model=32, n_heads=4 -> head_dim = d_k = d_v = 8
    bs, n_heads, q_len, seq_len = 2, 4, 8, 8
    d_model = 32
    head_dim = d_model // n_heads

    key = jax.random.PRNGKey(0)
    kq, kk, kv, kp = jax.random.split(key, 4)
    q = jax.random.normal(kq, (bs, n_heads, q_len, head_dim), dtype=jnp.float32)
    k = jax.random.normal(kk, (bs, n_heads, head_dim, seq_len), dtype=jnp.float32)
    v = jax.random.normal(kv, (bs, n_heads, seq_len, head_dim), dtype=jnp.float32)

    # Deterministic parameter init (matches nn.Parameter(head_dim ** -0.5)).
    scale = head_dim ** (-0.5)

    # ---- variant 1: no masks / prev, bf16 MXU feed (flagged) ----
    out, attn = scaled_dot_product_attention(q, k, v, scale, mxu_bf16=True)
    jax.block_until_ready((out, attn))
    r_out, r_attn, _ = _reference(q, k, v, scale)
    np.testing.assert_allclose(np.asarray(out), np.asarray(r_out),
                               rtol=2e-2, atol=2e-2)
    np.testing.assert_allclose(np.asarray(attn), np.asarray(r_attn),
                               rtol=2e-2, atol=2e-2)

    # ---- variant 2: prev + masks, res_attention=True (exact MXU feed) ----
    prev = 0.1 * jax.random.normal(kp, (bs, n_heads, q_len, seq_len),
                                   dtype=jnp.float32)
    attn_mask = jnp.triu(jnp.ones((1, q_len, seq_len), dtype=bool), k=1)
    key_padding_mask = jnp.zeros((bs, seq_len), dtype=bool).at[:, -1].set(True)

    out2, attn2, scores2 = scaled_dot_product_attention(
        q, k, v, scale, prev=prev, key_padding_mask=key_padding_mask,
        attn_mask=attn_mask, res_attention=True)
    jax.block_until_ready((out2, attn2, scores2))
    r_out2, r_attn2, r_scores2 = _reference(q, k, v, scale, prev,
                                            key_padding_mask, attn_mask)
    np.testing.assert_allclose(np.asarray(out2), np.asarray(r_out2),
                               rtol=1e-2, atol=1e-2)
    np.testing.assert_allclose(np.asarray(attn2), np.asarray(r_attn2),
                               rtol=1e-2, atol=1e-2)
    np.testing.assert_allclose(np.asarray(scores2), np.asarray(r_scores2),
                               rtol=1e-2, atol=1e-2)

    # ---- variant 3: seq_len not a multiple of 128 (padded, lane-dense
    #      stores), multi-tile q axis, key-padding mask ----
    q_len3, seq_len3 = 16, 200
    k3q, k3k, k3v = jax.random.split(jax.random.PRNGKey(1), 3)
    q3 = jax.random.normal(k3q, (bs, n_heads, q_len3, head_dim), jnp.float32)
    k3 = jax.random.normal(k3k, (bs, n_heads, head_dim, seq_len3), jnp.float32)
    v3 = jax.random.normal(k3v, (bs, n_heads, seq_len3, head_dim), jnp.float32)
    kpm3 = jnp.zeros((bs, seq_len3), dtype=bool).at[:, -5:].set(True)

    out3, attn3, scores3 = scaled_dot_product_attention(
        q3, k3, v3, scale, key_padding_mask=kpm3, res_attention=True,
        tq_cap=8)
    jax.block_until_ready((out3, attn3, scores3))
    r_out3, r_attn3, r_scores3 = _reference(q3, k3, v3, scale,
                                            key_padding_mask=kpm3)
    np.testing.assert_allclose(np.asarray(out3), np.asarray(r_out3),
                               rtol=1e-2, atol=1e-2)
    np.testing.assert_allclose(np.asarray(attn3), np.asarray(r_attn3),
                               rtol=1e-2, atol=1e-2)
    np.testing.assert_allclose(np.asarray(scores3), np.asarray(r_scores3),
                               rtol=1e-2, atol=1e-2)

    print("KERNEL_OK")
</pallas_src>

<mosaic_0001>
module attributes {stable_mosaic.version = 11 : i64} {
  func.func @_sdpa_kernel(%arg0: i32, %arg1: i32, %arg2: memref<1xf32, #tpu.memory_space<smem>>, %arg3: memref<4x8x8xf32, #tpu.memory_space<vmem>>, %arg4: memref<4x8x8xf32, #tpu.memory_space<vmem>>, %arg5: memref<4x8x8xf32, #tpu.memory_space<vmem>>, %arg6: memref<4x8x8xf32, #tpu.memory_space<vmem>>, %arg7: memref<4x8x8xf32, #tpu.memory_space<vmem>>) attributes {dimension_semantics = [#tpu.dimension_semantics<parallel>, #tpu.dimension_semantics<arbitrary>], iteration_bounds = array<i64: 2, 1>, scalar_prefetch = 0 : i64, scratch_operands = 0 : i64, tpu.core_type = #tpu.core_type<tc>, window_params = [{transform_indices = @transform_0, window_bounds = array<i64: 1>}, {transform_indices = @transform_1, window_bounds = array<i64: 4, 8, 8>}, {transform_indices = @transform_2, window_bounds = array<i64: 4, 8, 8>}, {transform_indices = @transform_3, window_bounds = array<i64: 4, 8, 8>}, {transform_indices = @transform_4, window_bounds = array<i64: 4, 8, 8>}, {transform_indices = @transform_5, window_bounds = array<i64: 4, 8, 8>}]} {
    %c0 = arith.constant 0 : index
    %c0_0 = arith.constant 0 : index
    %c0_1 = arith.constant 0 : index
    %0 = vector.load %arg3[%c0, %c0_0, %c0_1] : memref<4x8x8xf32, #tpu.memory_space<vmem>>, vector<4x8x8xf32>
    %c0_2 = arith.constant 0 : index
    %c0_3 = arith.constant 0 : index
    %c0_4 = arith.constant 0 : index
    %1 = vector.load %arg4[%c0_2, %c0_3, %c0_4] : memref<4x8x8xf32, #tpu.memory_space<vmem>>, vector<4x8x8xf32>
    %c0_5 = arith.constant 0 : index
    %c0_6 = arith.constant 0 : index
    %c0_7 = arith.constant 0 : index
    %2 = vector.load %arg5[%c0_5, %c0_6, %c0_7] : memref<4x8x8xf32, #tpu.memory_space<vmem>>, vector<4x8x8xf32>
    %c0_8 = arith.constant 0 : index
    %3 = memref.load %arg2[%c0_8] : memref<1xf32, #tpu.memory_space<smem>>
    %4 = vector.broadcast %3 : f32 to vector<4x8x8xf32>
    %5 = arith.mulf %0, %4 : vector<4x8x8xf32>
    %6 = arith.truncf %5 : vector<4x8x8xf32> to vector<4x8x8xbf16>
    %7 = arith.truncf %1 : vector<4x8x8xf32> to vector<4x8x8xbf16>
    "tpu.trace_start"() <{level = 10 : i32, message = "bqd,bdk->bqk"}> : () -> ()
    %cst = arith.constant dense<0.000000e+00> : vector<4x8x8xf32>
    %8 = tpu.matmul %6, %7, %cst {dimension_numbers = #tpu.dot_dimension_numbers<[2], [1], [1], [2], [0, 0, 0, 1, 1, 2], [0], [0]>} : vector<4x8x8xbf16>, vector<4x8x8xbf16>, vector<4x8x8xf32> -> vector<4x8x8xf32>
    "tpu.trace_stop"() : () -> ()
    %cst_9 = arith.constant dense<0xFF800000> : vector<4x8xf32>
    %9 = vector.multi_reduction <maximumf>, %8, %cst_9 [2] : vector<4x8x8xf32> to vector<4x8xf32>
    %10 = vector.shape_cast %9 : vector<4x8xf32> to vector<4x8x1xf32>
    %11 = vector.broadcast %10 : vector<4x8x1xf32> to vector<4x8x8xf32>
    %12 = arith.subf %8, %11 : vector<4x8x8xf32>
    %13 = math.exp %12 : vector<4x8x8xf32>
    %cst_10 = arith.constant dense<0.000000e+00> : vector<4x8xf32>
    %14 = vector.multi_reduction <add>, %13, %cst_10 [2] : vector<4x8x8xf32> to vector<4x8xf32>
    %15 = vector.shape_cast %14 : vector<4x8xf32> to vector<4x8x1xf32>
    %16 = vector.broadcast %15 : vector<4x8x1xf32> to vector<4x8x8xf32>
    %17 = arith.divf %13, %16 : vector<4x8x8xf32>
    %18 = arith.truncf %17 : vector<4x8x8xf32> to vector<4x8x8xbf16>
    %19 = arith.truncf %2 : vector<4x8x8xf32> to vector<4x8x8xbf16>
    "tpu.trace_start"() <{level = 10 : i32, message = "bqk,bkd->bqd"}> : () -> ()
    %cst_11 = arith.constant dense<0.000000e+00> : vector<4x8x8xf32>
    %20 = tpu.matmul %18, %19, %cst_11 {dimension_numbers = #tpu.dot_dimension_numbers<[2], [1], [1], [2], [0, 0, 0, 1, 1, 2], [0], [0]>} : vector<4x8x8xbf16>, vector<4x8x8xbf16>, vector<4x8x8xf32> -> vector<4x8x8xf32>
    "tpu.trace_stop"() : () -> ()
    %c0_12 = arith.constant 0 : index
    %c0_13 = arith.constant 0 : index
    %c0_14 = arith.constant 0 : index
    %21 = vector.load %arg6[%c0_12, %c0_13, %c0_14] : memref<4x8x8xf32, #tpu.memory_space<vmem>>, vector<4x8x8xf32>
    tpu.vector_store %arg6[%c0_12, %c0_13, %c0_14], %20 {strides = array<i32>} : memref<4x8x8xf32, #tpu.memory_space<vmem>>, vector<4x8x8xf32>,
    %c0_15 = arith.constant 0 : index
    %c0_16 = arith.constant 0 : index
    %c0_17 = arith.constant 0 : index
    %22 = vector.load %arg7[%c0_15, %c0_16, %c0_17] : memref<4x8x8xf32, #tpu.memory_space<vmem>>, vector<4x8x8xf32>
    tpu.vector_store %arg7[%c0_15, %c0_16, %c0_17], %17 {strides = array<i32>} : memref<4x8x8xf32, #tpu.memory_space<vmem>>, vector<4x8x8xf32>,
    return
  }
  func.func @transform_0(%arg0: i32, %arg1: i32) -> i32 {
    %c0_i32 = arith.constant 0 : i32
    %c0_i32_0 = arith.constant 0 : i32
    return %c0_i32 : i32
  }
  func.func @transform_1(%arg0: i32, %arg1: i32) -> (i32, i32, i32) {
    %c0_i32 = arith.constant 0 : i32
    %c0_i32_0 = arith.constant 0 : i32
    return %arg0, %arg1, %c0_i32 : i32, i32, i32
  }
  func.func @transform_2(%arg0: i32, %arg1: i32) -> (i32, i32, i32) {
    %c0_i32 = arith.constant 0 : i32
    %c0_i32_0 = arith.constant 0 : i32
    %c0_i32_1 = arith.constant 0 : i32
    return %arg0, %c0_i32, %c0_i32_0 : i32, i32, i32
  }
  func.func @transform_3(%arg0: i32, %arg1: i32) -> (i32, i32, i32) {
    %c0_i32 = arith.constant 0 : i32
    %c0_i32_0 = arith.constant 0 : i32
    %c0_i32_1 = arith.constant 0 : i32
    return %arg0, %c0_i32, %c0_i32_0 : i32, i32, i32
  }
  func.func @transform_4(%arg0: i32, %arg1: i32) -> (i32, i32, i32) {
    %c0_i32 = arith.constant 0 : i32
    %c0_i32_0 = arith.constant 0 : i32
    return %arg0, %arg1, %c0_i32 : i32, i32, i32
  }
  func.func @transform_5(%arg0: i32, %arg1: i32) -> (i32, i32, i32) {
    %c0_i32 = arith.constant 0 : i32
    %c0_i32_0 = arith.constant 0 : i32
    return %arg0, %arg1, %c0_i32 : i32, i32, i32
  }
}

</mosaic_0001>

<bundles_post_ra>
// kernel: tpu_custom_call.1
= control target key start
LH: loop header
LB: loop body
LE: loop exit
PB: predicated region body
PF: predicated region fallthrough
CT: control target
= control target key end

     0   :  { %s1485_s0 = inlined_call_operand.<no memory space> [shape: f32[1], index: 0, kind: input, shape index: {}]   ;;  %s1486_s1 = inlined_call_operand.hbm [shape: f32[8,8,8], index: 1, kind: input, shape index: {}]   ;;  %s1487_s2 = inlined_call_operand.hbm [shape: f32[8,8,8], index: 2, kind: input, shape index: {}]   ;;  %s1488_s3 = inlined_call_operand.hbm [shape: f32[8,8,8], index: 3, kind: input, shape index: {}]   ;;  %s1489_s4 = inlined_call_operand.hbm [shape: f32[8,8,8], index: 4, kind: output, shape index: {0}]   ;;  %s1490_s5 = inlined_call_operand.hbm [shape: f32[8,8,8], index: 5, kind: output, shape index: {1}]  }
   0x1   :  { %1497 = sst [smem:[#allocation22_spill]] %s1487_s2 }
   0x2   :  { %11 = sst [smem:[#allocation2]] %s1485_s0 }
   0x3   :  { %12 = vsyncpa [#allocation4], 0 }
   0x4   :  { %14 = vsyncpa [#allocation4 + $0x1], 0 }
   0x5   :  { %15 = vsyncpa [#allocation7], 0 }
   0x6   :  { %17 = vsyncpa [#allocation7 + $0x1], 0 }
   0x7   :  { %18 = vsyncpa [#allocation5], 0 }
   0x8   :  { %20 = vsyncpa [#allocation5 + $0x1], 0 }
   0x9   :  { %21 = vsyncpa [#allocation11], 0 }
   0xa   :  { %23 = vsyncpa [#allocation11 + $0x1], 0  ;;  %s1242_s20 = smov 0   ;;  %s1244_s21 = smov 0  }
   0xb   :  { %s1246_s22 = smov 0   ;;  %s1248_s23 = smov 0  }
   0xc   :  { %s1250_s24 = smov 0   ;;  %s1252_s25 = smov 0  }
   0xd LB: > { %1498 = sst [smem:[#allocation16_spill]] %s1191_s22  ;;  %s1273_s0 = sadd.s32 4294967295, %s1203_s25   ;;  %s1203_s25 = sphi %s1252_s25, %s29_s25   ;;  %s1199_s24 = sphi %s1250_s24, %s1516_s24   ;;  %s1195_s23 = sphi %s1248_s23, %s1515_s23   ;;  %s1191_s22 = sphi %s1246_s22, %s1514_s22   ;;  %s1187_s21 = sphi %s1244_s21, %s1518_s21   ;;  %s1183_s20 = sphi %s1242_s20, %s1517_s20  }
   0xe   : > { %1499 = sst [smem:[#allocation17_spill]] %s1199_s24  ;;  %s859_s26 = sadd.s32 4294967294, %s1203_s25  }
   0xf   : > { %1500 = sst [smem:[#allocation18_spill]] %s1203_s25  ;;  %s41_s27 = sadd.s32 1, %s1199_s24 }
  0x10   : > { %s71_s28 = sadd.s32 1, %s1191_s22  ;;  %p43_p0 = scmp.ge.s32.totalorder %s41_s27, 2 }
  0x11   : > { %p78_p1 = scmp.ne.s32.totalorder %s1191_s22, %s1187_s21  ;;  %p79_p2 = scmp.eq.s32.totalorder %s1203_s25, 0 }
  0x12   : > { %p84_p3 = scmp.ne.s32.totalorder %s1187_s21, %s1183_s20  ;;  %s1520_s27 = smov (%p43_p0, %s41_s27), 0 }
  0x13   : > { %1501 = sst [smem:[#allocation19_spill]] %s1520_s27  ;;  %p1285_p4 = por %p79_p2, %p78_p1 }
  0x14   : > { %p85_p5 = scmp.eq.s32.totalorder %s1273_s0, 0  ;;  %s66_s30 = ssub.s32 %s1199_s24, %s1520_s27 }
  0x15   : > { %p162_p6 = scmp.eq.s32.totalorder %s1273_s0, 1  ;;  %p69_p7 = scmp.eq.s32.totalorder %s66_s30, 0 }
  0x16   : > { %p1293_p8 = por %p85_p5, %p84_p3  ;;  %p168_p10 = scmp.eq.s32.totalorder %s859_s26, 1 }
  0x17   : > { %p1297_p9 = por %p162_p6, %p78_p1  ;;  %p861_p12 = scmp.ge.s32.totalorder %s1203_s25, 2 }
  0x18   : > { %s1302_s8 = scalar_select %p69_p7, %s1191_s22, %s71_s28  }
  0x19   : > { %p1304_p11 = por %p168_p10, %p84_p3  ;;  %p925_p13 = scmp.lt.s32.totalorder %s1203_s25, 2 }
  0x1a   : > { %1505 = sst [smem:[#allocation20_spill]] %s1302_s8  ;;  %s219_s10 = sand.u32 1, %s1191_s22  }
  0x1b   : > { %s1506_s9 = scalar_select %p1304_p11, 1, 0 }
  0x1c   : > { %s1311_s11 = sshll.u32 %s219_s10, 5  ;;  %s893_s12 = sshll.u32 %s1199_s24, 5 }
  0x1d   : > { %1507 = sst [smem:[#allocation21_spill]] %s1506_s9  ;;  %p1316_p0 = pnand %p925_p13, %p1285_p4 }
  0x1e   : > { %s242_s14 = sand.u32 1, %s1203_s25   ;;  %s1509_s2 = sld [smem:[#allocation22_spill]] }
  0x1f   : > { %s246_s19 = scalar_lea.vmem [#allocation6], %s1311_s11  ;;  %s243_s28 = scalar_lea.sflag [#allocation7], %s242_s14 }
  0x20   : > { %s254_s26 = sshll.u32 %s246_s19, 4  ;;  %s1205_s30 = smov 128   ;;  %s255_s26 = int_to_ptr.vmem [resolvable:$true] %s254_s26 }
  0x21   : > { %s1206_s29 = smov 8   ;;  %p871_p1 = scmp.ge.s32.totalorder %s1203_s25, 1 }
  0x22   : > { %p284_p2 = scmp.lt.s32.totalorder %s1203_s25, 3  ;;  %s220_s14 = scalar_lea.sflag [#allocation4], %s219_s10 }
  0x23   : > { %s273_s8 = scalar_lea.hbm %s1488_s3, %s893_s12  ;;  %s268_s25 = scalar_lea.vmem [#allocation8], %s1311_s11 }
  0x24   : > { %s251_s17 = scalar_lea.hbm %s1509_s2, %s893_s12  ;;  %p1329_p3 = pnand %p871_p1, %p284_p2 }
  0x25   : > { %s252_s18 = sshll.u32 %s251_s17, 4  ;;  %s229_s17 = scalar_lea.hbm %s1486_s1, %s893_s12  ;;  %s253_s18 = int_to_ptr.hbm [resolvable:$true] %s252_s18 }
  0x26   : > { %914 = dma.hbm_to_vmem [thread:$0]  (!%p1316_p0), %s253_s18, 512, %s255_s26, %s243_s28, %s1205_s30, %s1205_s30, %s1206_s29  }
  0x27   : > { %s230_s19 = sshll.u32 %s229_s17, 4  ;;  %s223_s2 = scalar_lea.vmem [#allocation3], %s1311_s11  ;;  %s231_s19 = int_to_ptr.hbm [resolvable:$true] %s230_s19 }
  0x28   : > { %s232_s24 = sshll.u32 %s223_s2, 4  ;;  %s274_s22 = sshll.u32 %s273_s8, 4  ;;  %s233_s24 = int_to_ptr.vmem [resolvable:$true] %s232_s24  ;;  %s275_s22 = int_to_ptr.hbm [resolvable:$true] %s274_s22 }
  0x29   : > { %911 = dma.hbm_to_vmem [thread:$0]  (!%p1316_p0), %s231_s19, 512, %s233_s24, %s220_s14, %s1205_s30, %s1205_s30, %s1206_s29  }
  0x2a   : > { %s276_s9 = sshll.u32 %s268_s25, 4  ;;  %288 = sbr.rel (%p1329_p3) target bundleno = 608 (0x260), region = 36  ;;  %s277_s9 = int_to_ptr.vmem [resolvable:$true] %s276_s9 }
  0x2b   : > { %917 = dma.hbm_to_vmem [thread:$0]  (!%p1316_p0), %s275_s22, 512, %s277_s9, %s243_s28, %s1205_s30, %s1205_s30, %s1206_s29  }
  0x2c   : > { %s1348_s2 = sand.u32 (!%p1329_p3), 1, %s1187_s21  }
  0x2d   : > { %s1351_s24 = sshll.u32 (!%p1329_p3), %s1348_s2, 5  ;;  %s291_s10 = scalar_lea.sflag (!%p1329_p3), [#allocation4], %s1348_s2 }
  0x2e   : > { %s294_s8 = scalar_lea.vmem (!%p1329_p3), [#allocation3], %s1351_s24 }
  0x2f   : > { %1166 = dma.done.wait (%p1293_p8), %s291_s10, 512  }
  0x30   : > { %1168 = vsyncadd (%p1293_p8), %s291_s10, 4294966784  ;;  %s300_s22 = sand.u32 1, %s1273_s0   ;;  %s304_s27 = scalar_lea.vmem [#allocation6], %s1351_s24 }
  0x31   : > { %s301_s25 = scalar_lea.sflag [#allocation7], %s300_s22 }
  0x32   : > { %1170 = dma.done.wait (%p1293_p8), %s301_s25, 1024  }
  0x33   : > { %1172 = vsyncadd (%p1293_p8), %s301_s25, 4294966272  ;;  %s375_s9 = sld [smem:[#allocation2]]  ;;  %v367_v0 = vld [vmem:[%s304_s27] sm:$0xff]  ;;  %vm393_vm0 = vcmask 1043456   ;;  %v369_v1 = vld [vmem:[%s304_s27 + $0x10] sm:$0xff]  ;;  %vm389_vm1 = vcmask 64512  }
  0x34   : > { %v370_v2 = vld [vmem:[%s304_s27 + $0x18] sm:$0xff]  ;;  %v385_v4 = vpack.c.bf16 %v367_v0, %v367_v0  ;;  %v387_v5 = vpack.c.bf16 %v369_v1, %v369_v1  ;;  %v363_v7 = vld [vmem:[%s294_s8] sm:$0xff]  ;;  %v365_v8 = vld [vmem:[%s294_s8 + $0x10] sm:$0xff]  ;;  %s314_s0 = scalar_lea.vmem [#allocation8], %s1351_s24  ;;  %s1400_s6 = scalar_lea.vmem [#allocation10], %s1351_s24 }
  0x35   : > { %v388_v6 = vpack.c.bf16 %v370_v2, %v370_v2  ;;  %v366_v9 = vld [vmem:[%s294_s8 + $0x18] sm:$0xff]  ;;  %v368_v13 = vld [vmem:[%s304_s27 + $0x8] sm:$0xff]  ;;  %v371_v57 = vld [vmem:[%s314_s0] sm:$0xff]  ;;  %s896_s11 = sshll.u32 %s1195_s23, 5  ;;  %s692_s12 = sshll.u32 %s1400_s6, 4  ;;  %s693_s12 = int_to_ptr.vmem [resolvable:$true] %s692_s12 }
  0x36   : > { %v364_v14 = vld [vmem:[%s294_s8 + $0x8] sm:$0xff]  ;;  %v395_v15 = vsel %vm393_vm0, %v385_v4, 0  ;;  %v433_v16 = vsel %vm393_vm0, %v387_v5, 0  ;;  %v386_v18 = vpack.c.bf16 %v368_v13, %v368_v13  ;;  %v567_v58 = vpack.c.bf16 %v371_v57, %v371_v57  ;;  %v373_v60 = vld [vmem:[%s314_s0 + $0x10] sm:$0xff]  ;;  %v374_v2 = vld [vmem:[%s314_s0 + $0x18] sm:$0xff]  ;;  %s691_s30 = scalar_lea.hbm %s1490_s5, %s896_s11  ;;  %s661_s15 = scalar_lea.sflag [#allocation11], %s1348_s2 }
  0x37   : > { %v452_v17 = vsel %vm393_vm0, %v388_v6, 0  ;;  %404 = vmatpush.bf16.msra.mxu0 %v395_v15  ;;  %442 = vmatpush.bf16.msra.mxu2 %v433_v16  ;;  %v569_v61 = vpack.c.bf16 %v373_v60, %v373_v60  ;;  %v372_v62 = vld [vmem:[%s314_s0 + $0x8] sm:$0xff]  ;;  %s694_s29 = sshll.u32 %s691_s30, 4  ;;  %s1105_s18 = scalar_lea.hbm %s1490_s5, 64  ;;  %s695_s29 = int_to_ptr.hbm [resolvable:$true] %s694_s29 }
  0x38   : > { %461 = vmatpush.bf16.msra.mxu3 %v452_v17  ;;  %v414_v22 = vsel %vm393_vm0, %v386_v18, 0  ;;  %v575_v59 = vsel %vm393_vm0, %v567_v58, 0  ;;  %v568_v0 = vpack.c.bf16 %v372_v62, %v372_v62  ;;  %s1099_s16 = sshra.s32 %s695_s29, 4  ;;  %s1100_s16 = int_to_ptr.hbm [resolvable:$true] %s1099_s16 }
  0x39   : > { %v376_v3 = vstv %s375_s9  ;;  %423 = vmatpush.bf16.msra.mxu1 %v414_v22  ;;  %v613_v63 = vsel %vm393_vm0, %v569_v61, 0  ;;  %s1101_s17 = scalar_lea.hbm %s1100_s16, 32  ;;  %p1106_p7 = scmp.lt.s32.totalorder %s1100_s16, %s1490_s5 }
  0x3a   : > { %v377_v10 = vmul.f32 %v376_v3, %v363_v7  ;;  %v379_v11 = vmul.f32 %v376_v3, %v365_v8  ;;  %v380_v12 = vmul.f32 %v376_v3, %v366_v9  ;;  %v378_v23 = vmul.f32 %v376_v3, %v364_v14  ;;  %p1102_p4 = scmp.ne.s32.totalorder %s1100_s16, %s1101_s17  ;;  %p1107_p8 = scmp.lt.s32.totalorder %s1105_s18, %s1101_s17 }
  0x3b   : > { %584 = vmatpush.bf16.msrb.mxu0 %v575_v59  ;;  %622 = vmatpush.bf16.msrb.mxu2 %v613_v63  ;;  %v594_v1 = vsel %vm393_vm0, %v568_v0, 0  ;;  %v570_v3 = vpack.c.bf16 %v374_v2, %v374_v2 }
  0x3c   : > { %v381_v19 = vpack.c.bf16 %v377_v10, %v377_v10  ;;  %v383_v20 = vpack.c.bf16 %v379_v11, %v379_v11  ;;  %v384_v21 = vpack.c.bf16 %v380_v12, %v380_v12  ;;  %v382_v24 = vpack.c.bf16 %v378_v23, %v378_v23  ;;  %p1103_p5 = pnand %p1102_p4, %p1297_p9  ;;  %p1108_p10 = por %p1107_p8, %p1106_p7 }
  0x3d   : > { %603 = vmatpush.bf16.msrb.mxu1 %v594_v1  ;;  %v632_v5 = vsel %vm393_vm0, %v570_v3, 0 }
  0x3e   : > { %877 = vmatmul.msk.bf16.vlgmr.msra.gmra.mxu0 %vm389_vm1, %v381_v19  ;;  %879 = vmatmul.msk.bf16.vlgmr.msra.gmra.mxu2 %vm389_vm1, %v383_v20  ;;  %p1104_p6 = pneg %p1103_p5 }
  0x3f   : > { %880 = vmatmul.msk.bf16.vlgmr.msra.gmra.mxu3 %vm389_vm1, %v384_v21  ;;  %878 = vmatmul.msk.bf16.vlgmr.msra.gmra.mxu1 %vm389_vm1, %v382_v24 }
  0x40   : > { %641 = vmatpush.bf16.msrb.mxu3 %v632_v5  ;;  %p1109_p13 = pnand %p1108_p10, %p1104_p6 }
  0xbb   : > { %v406_v25 = vpop.f32.mrf.mxu0 }
  0xbc   : > { %v467_v26 = vsel %vm389_vm1, %v406_v25, -inf  ;;  %v425_v27 = vpop.f32.mrf.mxu1 }
  0xbd   : > { %468 = vmax.xlane.f32.xlu1 %v467_v26  ;;  %v470_v31 = vsel %vm389_vm1, %v425_v27, -inf }
  0xc1   : > { %v444_v28 = vpop.f32.mrf.mxu2 }
  0xc2   : > { %v463_v29 = vpop.f32.mrf.mxu3  ;;  %v473_v30 = vsel %vm389_vm1, %v444_v28, -inf }
  0xc3   : > { %474 = vmax.xlane.f32.xlu0 %v473_v30  ;;  %v408_v32 = vpop.f32.mrf.mxu0  ;;  %v476_v34 = vsel %vm389_vm1, %v463_v29, -inf }
  0xc4   : > { %v427_v33 = vpop.f32.mrf.mxu1 }
  0xc5   : > { %471 = vmax.xlane.f32.xlu1 %v470_v31 }
  0xc9   : > { %v446_v35 = vpop.f32.mrf.mxu2 }
  0xca   : > { %v465_v36 = vpop.f32.mrf.mxu3 }
  0xcb   : > { %477 = vmax.xlane.f32.xlu0 %v476_v34 }
 0x130   : > { %v469_v37 = vpop.xlane.xlu1 %468 }
 0x131   : > { %v479_v38 = vsub.f32 %v406_v25, %v469_v37 }
 0x133   : > { %v483_v39 = vmul.f32 1.442695, %v479_v38 }
 0x135   : > { %979 = vpow2.f32 %v483_v39 }
 0x136   : > { %v475_v40 = vpop.xlane.xlu0 %474 }
 0x137   : > { %v481_v41 = vsub.f32 %v444_v28, %v475_v40 }
 0x138   : > { %v472_v42 = vpop.xlane.xlu1 %471 }
 0x139   : > { %v487_v43 = vmul.f32 1.442695, %v481_v41  ;;  %v480_v44 = vsub.f32 %v425_v27, %v472_v42 }
 0x13b   : > { %v1377_v45 = vpop.eup %979  ;;  %981 = vpow2.f32 %v487_v43  ;;  %v485_v46 = vmul.f32 1.442695, %v480_v44 }
 0x13c   : > { %v491_v47 = vsel %vm389_vm1, %v1377_v45, 0.0 }
 0x13d   : > { %983 = vpow2.f32 %v485_v46  ;;  %492 = vadd.xlane.f32.xlu0 %v491_v47 }
 0x13e   : > { %v478_v48 = vpop.xlane.xlu0 %477 }
 0x13f   : > { %v482_v49 = vsub.f32 %v463_v29, %v478_v48 }
 0x141   : > { %v1381_v50 = vpop.eup %981  ;;  %v489_v51 = vmul.f32 1.442695, %v482_v49 }
 0x142   : > { %v497_v52 = vsel %vm389_vm1, %v1381_v50, 0.0 }
 0x143   : > { %v1385_v53 = vpop.eup %983  ;;  %985 = vpow2.f32 %v489_v51  ;;  %498 = vadd.xlane.f32.xlu2 %v497_v52 }
 0x144   : > { %v494_v54 = vsel %vm389_vm1, %v1385_v53, 0.0 }
 0x145   : > { %495 = vadd.xlane.f32.xlu1 %v494_v54 }
 0x149   : > { %v1389_v55 = vpop.eup %985 }
 0x14a   : > { %v500_v56 = vsel %vm389_vm1, %v1389_v55, 0.0 }
 0x14b   : > { %501 = vadd.xlane.f32.xlu2 %v500_v56 }
 0x1b0   : > { %v493_v4 = vpop.xlane.xlu0 %492 }
 0x1b1   : > { %987 = vrcp.f32 %v493_v4  ;;  %v514_v11 = vand.u32 2147483648, %v493_v4  ;;  %v512_v13 = vand.u32 2147483647, %v493_v4  ;;  %vm508_vm3 = vweird.f32 %v493_v4 }
 0x1b3   : > { %v515_v19 = vor.u32 1.1754944e-38, %v514_v11  ;;  %vm513_vm5 = vcmp.eq.f32.partialorder %v512_v13, 8.507059e+37 }
 0x1b6   : > { %v499_v6 = vpop.xlane.xlu2 %498 }
 0x1b7   : > { %v988_v7 = vpop.eup %987  ;;  %989 = vrcp.f32 %v499_v6  ;;  %v542_v24 = vand.u32 2147483647, %v499_v6  ;;  %v544_v25 = vand.u32 2147483648, %v499_v6  ;;  %vm538_vm7 = vweird.f32 %v499_v6 }
 0x1b8   : > { %v504_v8 = vmul.f32 %v988_v7, %v493_v4  ;;  %v496_v9 = vpop.xlane.xlu1 %495  ;;  %vm509_vm2 = vweird.f32 %v988_v7 }
 0x1b9   : > { %991 = vrcp.f32 %v496_v9  ;;  %vm510_vm4 = vmor %vm508_vm3, %vm509_vm2  ;;  %v527_v29 = vand.u32 2147483647, %v496_v9  ;;  %v529_v30 = vand.u32 2147483648, %v496_v9  ;;  %vm543_vm10 = vcmp.eq.f32.partialorder %v542_v24, 8.507059e+37 }
 0x1ba   : > { %v505_v10 = vsub.f32 1.0, %v504_v8  ;;  %v545_v35 = vor.u32 1.1754944e-38, %v544_v25  ;;  %vm523_vm11 = vweird.f32 %v496_v9 }
 0x1bb   : > { %v530_v39 = vor.u32 1.1754944e-38, %v529_v30  ;;  %vm528_vm13 = vcmp.eq.f32.partialorder %v527_v29, 8.507059e+37 }
 0x1bc   : > { %v506_v12 = vmul.f32 %v988_v7, %v505_v10 }
 0x1bd   : > { %v990_v14 = vpop.eup %989 }
 0x1be   : > { %v507_v15 = vadd.f32 %v988_v7, %v506_v12  ;;  %v534_v16 = vmul.f32 %v990_v14, %v499_v6  ;;  %v502_v17 = vpop.xlane.xlu2 %501  ;;  %vm539_vm6 = vweird.f32 %v990_v14 }
 0x1bf   : > { %v992_v18 = vpop.eup %991  ;;  %993 = vrcp.f32 %v502_v17  ;;  %vm540_vm9 = vmor %vm538_vm7, %vm539_vm6  ;;  %v559_v46 = vand.u32 2147483648, %v502_v17  ;;  %vm553_vm15 = vweird.f32 %v502_v17 }
 0x1c0   : > { %v511_v20 = vsel %vm510_vm4, %v988_v7, %v507_v15  ;;  %v535_v21 = vsub.f32 1.0, %v534_v16  ;;  %v519_v22 = vmul.f32 %v992_v18, %v496_v9  ;;  %vm524_vm8 = vweird.f32 %v992_v18 }
 0x1c1   : > { %v516_v23 = vsel %vm513_vm5, %v515_v19, %v511_v20  ;;  %vm525_vm12 = vmor %vm523_vm11, %vm524_vm8 }
 0x1c2   : > { %v536_v26 = vmul.f32 %v990_v14, %v535_v21  ;;  %v520_v27 = vsub.f32 1.0, %v519_v22  ;;  %v517_v28 = vmul.f32 %v1377_v45, %v516_v23  ;;  %v557_v45 = vand.u32 2147483647, %v502_v17 }
 0x1c4   : > { %v537_v31 = vadd.f32 %v990_v14, %v536_v26  ;;  %v521_v32 = vmul.f32 %v992_v18, %v520_v27  ;;  %v563_v33 = vpack.c.bf16 %v517_v28, %v517_v28  ;;  %651 = vst.msk [vmem:[%s1400_s6] sm:$0xff] %vm389_vm1, %v517_v28  ;;  %vm558_vm2 = vcmp.eq.f32.partialorder %v557_v45, 8.507059e+37 }
 0x1c5   : > { %v994_v34 = vpop.eup %993 }
 0x1c6   : > { %v541_v36 = vsel %vm540_vm9, %v990_v14, %v537_v31  ;;  %v522_v37 = vadd.f32 %v992_v18, %v521_v32  ;;  %v549_v38 = vmul.f32 %v994_v34, %v502_v17  ;;  %881 = vmatmul.msk.bf16.vlgmr.msrb.gmra.mxu0 %vm389_vm1, %v563_v33  ;;  %vm554_vm14 = vweird.f32 %v994_v34 }
 0x1c7   : > { %v546_v40 = vsel %vm543_vm10, %v545_v35, %v541_v36  ;;  %vm555_vm0 = vmor %vm553_vm15, %vm554_vm14 }
 0x1c8   : > { %v526_v41 = vsel %vm525_vm12, %v992_v18, %v522_v37  ;;  %v550_v42 = vsub.f32 1.0, %v549_v38  ;;  %v547_v43 = vmul.f32 %v1381_v50, %v546_v40  ;;  %v560_v50 = vor.u32 1.1754944e-38, %v559_v46 }
 0x1c9   : > { %v531_v44 = vsel %vm528_vm13, %v530_v39, %v526_v41 }
 0x1ca   : > { %v551_v47 = vmul.f32 %v994_v34, %v550_v42  ;;  %v565_v48 = vpack.c.bf16 %v547_v43, %v547_v43  ;;  %653 = vst.msk [vmem:[%s1400_s6 + $0x10] sm:$0xff] %vm389_vm1, %v547_v43  ;;  %v532_v49 = vmul.f32 %v1385_v53, %v531_v44 }
 0x1cc   : > { %v552_v51 = vadd.f32 %v994_v34, %v551_v47  ;;  %883 = vmatmul.msk.bf16.vlgmr.msrb.gmra.mxu2 %vm389_vm1, %v565_v48  ;;  %v564_v52 = vpack.c.bf16 %v532_v49, %v532_v49  ;;  %652 = vst.msk [vmem:[%s1400_s6 + $0x8] sm:$0xff] %vm389_vm1, %v532_v49 }
 0x1ce   : > { %v556_v54 = vsel %vm555_vm0, %v994_v34, %v552_v51  ;;  %882 = vmatmul.msk.bf16.vlgmr.msrb.gmra.mxu1 %vm389_vm1, %v564_v52 }
 0x1cf   : > { %v561_v56 = vsel %vm558_vm2, %v560_v50, %v556_v54 }
 0x1d0   : > { %v562_v53 = vmul.f32 %v1389_v55, %v561_v56 }
 0x1d2   : > { %v566_v57 = vpack.c.bf16 %v562_v53, %v562_v53  ;;  %654 = vst.msk [vmem:[%s1400_s6 + $0x18] sm:$0xff] %vm389_vm1, %v562_v53 }
 0x1d4   : > { %884 = vmatmul.msk.bf16.vlgmr.msrb.gmra.mxu3 %vm389_vm1, %v566_v57 }
 0x1d5   : > { %1112 = shalt.err (!%p1109_p13)
}
 0x1d6   : > { %s1207_s8 = smov 128   ;;  %s1208_s22 = smov 8  }
 0x1d7   : > { %905 = dma.vmem_to_hbm [thread:$0]  (%p1297_p9), %s693_s12, 512, %s695_s29, %s661_s15, %s1207_s8, %s1207_s8, %s1208_s22  }
 0x1d8   : > { %s349_s25 = scalar_lea.vmem [#allocation9], %s1351_s24  ;;  %s673_s0 = scalar_lea.hbm %s1489_s4, %s896_s11 }
 0x1d9   : > { %s674_s6 = sshll.u32 %s349_s25, 4  ;;  %s676_s12 = sshll.u32 %s673_s0, 4  ;;  %s675_s6 = int_to_ptr.vmem [resolvable:$true] %s674_s6  ;;  %s677_s12 = int_to_ptr.hbm [resolvable:$true] %s676_s12 }
 0x1da   : > { %s656_s24 = scalar_lea.sflag [#allocation5], %s1348_s2  ;;  %s1127_s13 = sshra.s32 %s677_s12, 4  ;;  %s1128_s13 = int_to_ptr.hbm [resolvable:$true] %s1127_s13 }
 0x1db   : > { %s1129_s28 = scalar_lea.hbm %s1128_s13, 32  ;;  %s1133_s11 = scalar_lea.hbm %s1489_s4, 64 }
 0x1dc   : > { %p1130_p0 = scmp.ne.s32.totalorder %s1128_s13, %s1129_s28  ;;  %p1134_p3 = scmp.lt.s32.totalorder %s1128_s13, %s1489_s4 }
 0x1dd   : > { %p1135_p4 = scmp.lt.s32.totalorder %s1133_s11, %s1129_s28 }
 0x1de   : > { %p1131_p1 = pnand %p1130_p0, %p1297_p9 }
 0x1df   : > { %p1136_p5 = por %p1135_p4, %p1134_p3 }
 0x1e0   : > { %p1132_p2 = pneg %p1131_p1 }
 0x1e2   : > { %p1137_p6 = pnand %p1136_p5, %p1132_p2 }
 0x243   : > { %v586_v55 = vpop.f32.mrf.mxu0 }
 0x244   : > { %647 = vst.msk [vmem:[%s349_s25] sm:$0xff] %vm389_vm1, %v586_v55 }
 0x24b   : > { %v588_v58 = vpop.f32.mrf.mxu0  ;;  %v605_v59 = vpop.f32.mrf.mxu1 }
 0x24c   : > { %648 = vst.msk [vmem:[%s349_s25 + $0x8] sm:$0xff] %vm389_vm1, %v605_v59 }
 0x24f   : > { %v624_v60 = vpop.f32.mrf.mxu2 }
 0x250   : > { %649 = vst.msk [vmem:[%s349_s25 + $0x10] sm:$0xff] %vm389_vm1, %v624_v60 }
 0x253   : > { %v607_v61 = vpop.f32.mrf.mxu1 }
 0x257   : > { %v626_v62 = vpop.f32.mrf.mxu2  ;;  %v643_v63 = vpop.f32.mrf.mxu3 }
 0x258   : > { %650 = vst.msk [vmem:[%s349_s25 + $0x18] sm:$0xff] %vm389_vm1, %v643_v63 }
 0x259   : > { %1140 = shalt.err (!%p1137_p6)
}
 0x25a   : > { %904 = dma.vmem_to_hbm [thread:$0]  (%p1297_p9), %s675_s6, 512, %s677_s12, %s656_s24, %s1207_s8, %s1207_s8, %s1208_s22  }
 0x25f   : > { %v645_v0 = vpop.f32.mrf.mxu3 }
 0x260 PF: > { %s1512_s16 = sld [smem:[#allocation18_spill]]  ;;  %s709_s17 = sand.u32 1, %s1183_s20  }
 0x261   : > { %p919_p7 = pnand %p861_p12, %p1304_p11  ;;  %s710_s19 = scalar_lea.sflag [#allocation5], %s709_s17 }
 0x263   : > { %p920_p8 = pneg %p919_p7 }
 0x265   : > { %1174 = dma.done.wait (%p920_p8), %s710_s19, 512  }
 0x266   : > { %1176 = vsyncadd (%p920_p8), %s710_s19, 4294966784  ;;  %s720_s14 = scalar_lea.sflag [#allocation11], %s709_s17 }
 0x267   : > { %1178 = dma.done.wait (%p920_p8), %s720_s14, 512  }
 0x268   : > { %1180 = vsyncadd (%p920_p8), %s720_s14, 4294966784  ;;  %s29_s25 = sadd.s32 1, %s1512_s16   ;;  %s1513_s7 = sld [smem:[#allocation16_spill]] }
 0x269   : > { %p26_p10 = scmp.ge.s32.totalorder %s29_s25, 4   ;;  %s1514_s22 = sld [smem:[#allocation20_spill]] }
 0x26a   : > { %s1515_s23 = sld [smem:[#allocation17_spill]]  ;;  %s1517_s20 = smov %s1187_s21 }
 0x26b   : > { %s1516_s24 = sld [smem:[#allocation19_spill]]  ;;  %28 = sbr.rel (!%p26_p10) target bundleno = 13 (0xd), region = 122 }
 0x26e   : > { %s1518_s21 = smov %s1513_s7 }
 0x270   :  { %726 = vsyncpa [#allocation4], 1 }
 0x271   :  { %728 = vsyncpa [#allocation4 + $0x1], 1 }
 0x272   :  { %729 = vsyncpa [#allocation7], 1 }
 0x273   :  { %731 = vsyncpa [#allocation7 + $0x1], 1 }
 0x274   :  { %732 = vsyncpa [#allocation5], 1 }
 0x275   :  { %734 = vsyncpa [#allocation5 + $0x1], 1 }
 0x276   :  { %735 = vsyncpa [#allocation11], 1 }
 0x277   :  { %737 = vsyncpa [#allocation11 + $0x1], 1 }

</bundles_post_ra>
